<compile_context>
chip_gen: v5e
topology: v5e:2x2
jax: 0.10.0
libtpu: 0.0.40
codegen_flags: <defaults>
</compile_context>

<pallas_src>
import jax
import jax.numpy as jnp
from jax.experimental import pallas as pl
from jax.experimental.pallas import tpu as pltpu


LANE = 128  # TPU lane width; hidden/output lane dims are padded to this.


def _round_up(x, m):
    return ((x + m - 1) // m) * m


def mlp_kernel(x_ref, w1_ref, w23_ref, b_ref, o_ref):
    """One batch tile of the 3-layer MLP.

    x_ref   : (TB, in_size)   f32   input tile (cast to bf16 in-kernel)
    w1_ref  : (in_size, 128)  bf16  fc1 weight
    w23_ref : (256, 128)      bf16  rows 0:128 = fc2 weight (lane-padded),
                                    rows 128:256 = fc3 weight (padded)
    b_ref   : (8, 128)        f32   row0=b1, row1=b2(pad), row2=b3(pad)
    o_ref   : (TB, 128)       bf16  padded logits (lane-dense store)
    """
    b1 = b_ref[0:1, :]
    b2 = b_ref[1:2, :]
    b3 = b_ref[2:3, :]

    # fc1 + ReLU (bf16 MXU operands, f32 accumulate; epilogue in f32)
    x = x_ref[...].astype(jnp.bfloat16)
    h1 = jnp.dot(x, w1_ref[...], preferred_element_type=jnp.float32)
    h1 = jnp.maximum(h1 + b1, 0.0)
    # TODO(synk): dropout(p=0.5) omitted -- inference semantics (identity). For
    # training-mode dropout, seed pltpu.prng_seed and mask with prng_random_bits.

    # fc2 + ReLU (static sublane slices of the packed slab are zero-cost views)
    h2 = jnp.dot(h1.astype(jnp.bfloat16), w23_ref[:LANE, :],
                 preferred_element_type=jnp.float32)
    h2 = jnp.maximum(h2 + b2, 0.0)

    # fc3 (no activation)
    out = jnp.dot(h2.astype(jnp.bfloat16), w23_ref[LANE:, :],
                  preferred_element_type=jnp.float32)
    o_ref[...] = (out + b3).astype(o_ref.dtype)


def chatbot_forward(x, params, *, tb=None):
    """x: [B, input_size] f32. params: w1 [in,128], b1 [128], w2 [128,64],
    b2 [64], w3 [64,out], b3 [out] (weights already transposed vs PyTorch)."""
    B, in_size = x.shape
    hid1 = params["w1"].shape[1]            # 128
    hid2 = params["w2"].shape[1]            # 64
    out_size = params["w3"].shape[1]

    f32, bf16 = jnp.float32, jnp.bfloat16

    # Batch tile: 1024-row tiles once the batch is large (>=2 grid steps at
    # B>=2048 -> megacore on v7x, ~86% of HBM roofline); otherwise one
    # full-batch tile (x is f32 in HBM, so 8-row alignment is native).
    if tb is None:
        tb = 1024 if B >= 2048 else _round_up(B, 8)
    B_pad = _round_up(B, tb)

    # x stays f32 and un-padded in the lane dim; only row-pad the remainder.
    xp = x if B_pad == B else jnp.pad(x, ((0, B_pad - B), (0, 0)))

    # --- pack / pad / cast weights (small, one-off) ---
    w1 = params["w1"].astype(bf16)                                   # (in, 128)
    w23 = jnp.zeros((2 * LANE, LANE), bf16)
    w23 = w23.at[:LANE, :hid2].set(params["w2"].astype(bf16))        # fc2
    w23 = w23.at[LANE:LANE + hid2, :out_size].set(params["w3"].astype(bf16))  # fc3

    bias = jnp.zeros((8, LANE), f32)
    bias = bias.at[0, :hid1].set(params["b1"].reshape(-1))
    bias = bias.at[1, :hid2].set(params["b2"].reshape(-1))
    bias = bias.at[2, :out_size].set(params["b3"].reshape(-1))

    grid = (B_pad // tb,)
    out_padded = pl.pallas_call(
        mlp_kernel,
        out_shape=jax.ShapeDtypeStruct((B_pad, LANE), bf16),
        grid=grid,
        in_specs=[
            pl.BlockSpec((tb, in_size), lambda i: (i, 0)),       # x tile, pipelined
            pl.BlockSpec((in_size, LANE), lambda i: (0, 0)),     # w1, resident
            pl.BlockSpec((2 * LANE, LANE), lambda i: (0, 0)),    # [w2|w3] slab, resident
            pl.BlockSpec((8, LANE), lambda i: (0, 0)),           # bias slab, resident
        ],
        out_specs=pl.BlockSpec((tb, LANE), lambda i: (i, 0)),
        compiler_params=pltpu.CompilerParams(
            dimension_semantics=("parallel",),
        ),
    )(xp, w1, w23, bias)

    # Slice off lane/row padding and restore the module's f32 output dtype
    # (XLA fuses the cast into the slice pass; downstream consumers that can
    # read the padded bf16 layout should skip this entirely).
    return out_padded[:B, :out_size].astype(f32)


def init_params(key, input_size, output_size):
    """Mimics PyTorch nn.Linear default init: U(-1/sqrt(fan_in), +1/sqrt(fan_in))."""
    def linear(k, fan_in, fan_out):
        kw, kb = jax.random.split(k)
        bound = 1.0 / jnp.sqrt(fan_in)
        w = jax.random.uniform(kw, (fan_in, fan_out), jnp.float32, -bound, bound)
        b = jax.random.uniform(kb, (fan_out,), jnp.float32, -bound, bound)
        return w, b

    k1, k2, k3 = jax.random.split(key, 3)
    w1, b1 = linear(k1, input_size, 128)
    w2, b2 = linear(k2, 128, 64)
    w3, b3 = linear(k3, 64, output_size)
    return {"w1": w1, "b1": b1, "w2": w2, "b2": b2, "w3": w3, "b3": b3}


def reference_forward(x, p):
    """Same math & precision as the kernel: bf16 operands, f32 accumulation."""
    bf16, f32 = jnp.bfloat16, jnp.float32
    h1 = jnp.dot(x.astype(bf16), p["w1"].astype(bf16), preferred_element_type=f32)
    h1 = jnp.maximum(h1 + p["b1"], 0.0)
    h2 = jnp.dot(h1.astype(bf16), p["w2"].astype(bf16), preferred_element_type=f32)
    h2 = jnp.maximum(h2 + p["b2"], 0.0)
    out = jnp.dot(h2.astype(bf16), p["w3"].astype(bf16), preferred_element_type=f32)
    return out + p["b3"]


if __name__ == "__main__":
    key = jax.random.PRNGKey(0)
    kx, kp = jax.random.split(key)

    input_size = 32   # bag-of-words vocab size (small synthetic)
    output_size = 16  # number of intent classes
    batch = 8

    x = jax.random.normal(kx, (batch, input_size), jnp.float32)
    params = init_params(kp, input_size, output_size)

    out = chatbot_forward(x, params)
    out = jax.block_until_ready(out)

    # Kernel writes bf16 logits to HBM; round the reference the same way.
    ref = reference_forward(x, params)
    ref = ref.astype(jnp.bfloat16).astype(jnp.float32)

    assert out.shape == (batch, output_size), out.shape
    assert jnp.allclose(out, ref, atol=2e-2, rtol=2e-2), float(jnp.abs(out - ref).max())

    print("KERNEL_OK")
</pallas_src>

<mosaic_0001>
module attributes {stable_mosaic.version = 11 : i64} {
  func.func @mlp_kernel(%arg0: i32, %arg1: memref<8x32xf32, #tpu.memory_space<vmem>>, %arg2: memref<32x128xbf16, #tpu.memory_space<vmem>>, %arg3: memref<256x128xbf16, #tpu.memory_space<vmem>>, %arg4: memref<8x128xf32, #tpu.memory_space<vmem>>, %arg5: memref<8x128xbf16, #tpu.memory_space<vmem>>) attributes {dimension_semantics = [#tpu.dimension_semantics<parallel>], iteration_bounds = array<i64: 1>, scalar_prefetch = 0 : i64, scratch_operands = 0 : i64, tpu.core_type = #tpu.core_type<tc>, window_params = [{transform_indices = @transform_0, window_bounds = array<i64: 8, 32>}, {pipeline_mode = #tpu.pipeline_mode<synchronous>, transform_indices = @transform_1, window_bounds = array<i64: 32, 128>}, {pipeline_mode = #tpu.pipeline_mode<synchronous>, transform_indices = @transform_2, window_bounds = array<i64: 256, 128>}, {pipeline_mode = #tpu.pipeline_mode<synchronous>, transform_indices = @transform_3, window_bounds = array<i64: 8, 128>}, {transform_indices = @transform_4, window_bounds = array<i64: 8, 128>}]} {
    %c0 = arith.constant 0 : index
    %c0_0 = arith.constant 0 : index
    %0 = vector.load %arg4[%c0, %c0_0] : memref<8x128xf32, #tpu.memory_space<vmem>>, vector<1x128xf32>
    %c1 = arith.constant 1 : index
    %c0_1 = arith.constant 0 : index
    %1 = vector.load %arg4[%c1, %c0_1] : memref<8x128xf32, #tpu.memory_space<vmem>>, vector<1x128xf32>
    %c2 = arith.constant 2 : index
    %c0_2 = arith.constant 0 : index
    %2 = vector.load %arg4[%c2, %c0_2] : memref<8x128xf32, #tpu.memory_space<vmem>>, vector<1x128xf32>
    %c0_3 = arith.constant 0 : index
    %c0_4 = arith.constant 0 : index
    %3 = vector.load %arg1[%c0_3, %c0_4] : memref<8x32xf32, #tpu.memory_space<vmem>>, vector<8x32xf32>
    %4 = arith.truncf %3 : vector<8x32xf32> to vector<8x32xbf16>
    %c0_5 = arith.constant 0 : index
    %c0_6 = arith.constant 0 : index
    %5 = vector.load %arg2[%c0_5, %c0_6] : memref<32x128xbf16, #tpu.memory_space<vmem>>, vector<32x128xbf16>
    %cst = arith.constant dense<0.000000e+00> : vector<8x128xf32>
    %6 = tpu.matmul %4, %5, %cst {dimension_numbers = #tpu.dot_dimension_numbers<[1], [0], [0], [1], [0, 0, 1, 1], [], []>} : vector<8x32xbf16>, vector<32x128xbf16>, vector<8x128xf32> -> vector<8x128xf32>
    %7 = vector.broadcast %0 : vector<1x128xf32> to vector<8x128xf32>
    %8 = arith.addf %6, %7 : vector<8x128xf32>
    %cst_7 = arith.constant 0.000000e+00 : f32
    %9 = vector.broadcast %cst_7 : f32 to vector<8x128xf32>
    %10 = arith.maximumf %8, %9 : vector<8x128xf32>
    %11 = arith.truncf %10 : vector<8x128xf32> to vector<8x128xbf16>
    %c0_8 = arith.constant 0 : index
    %c0_9 = arith.constant 0 : index
    %12 = vector.load %arg3[%c0_8, %c0_9] : memref<256x128xbf16, #tpu.memory_space<vmem>>, vector<128x128xbf16>
    %cst_10 = arith.constant dense<0.000000e+00> : vector<8x128xf32>
    %13 = tpu.matmul %11, %12, %cst_10 {dimension_numbers = #tpu.dot_dimension_numbers<[1], [0], [0], [1], [0, 0, 1, 1], [], []>} : vector<8x128xbf16>, vector<128x128xbf16>, vector<8x128xf32> -> vector<8x128xf32>
    %14 = vector.broadcast %1 : vector<1x128xf32> to vector<8x128xf32>
    %15 = arith.addf %13, %14 : vector<8x128xf32>
    %cst_11 = arith.constant 0.000000e+00 : f32
    %16 = vector.broadcast %cst_11 : f32 to vector<8x128xf32>
    %17 = arith.maximumf %15, %16 : vector<8x128xf32>
    %18 = arith.truncf %17 : vector<8x128xf32> to vector<8x128xbf16>
    %c128 = arith.constant 128 : index
    %c0_12 = arith.constant 0 : index
    %19 = vector.load %arg3[%c128, %c0_12] : memref<256x128xbf16, #tpu.memory_space<vmem>>, vector<128x128xbf16>
    %cst_13 = arith.constant dense<0.000000e+00> : vector<8x128xf32>
    %20 = tpu.matmul %18, %19, %cst_13 {dimension_numbers = #tpu.dot_dimension_numbers<[1], [0], [0], [1], [0, 0, 1, 1], [], []>} : vector<8x128xbf16>, vector<128x128xbf16>, vector<8x128xf32> -> vector<8x128xf32>
    %21 = vector.broadcast %2 : vector<1x128xf32> to vector<8x128xf32>
    %22 = arith.addf %20, %21 : vector<8x128xf32>
    %23 = arith.truncf %22 : vector<8x128xf32> to vector<8x128xbf16>
    %c0_14 = arith.constant 0 : index
    %c0_15 = arith.constant 0 : index
    %24 = vector.load %arg5[%c0_14, %c0_15] : memref<8x128xbf16, #tpu.memory_space<vmem>>, vector<8x128xbf16>
    tpu.vector_store %arg5[%c0_14, %c0_15], %23 {strides = array<i32>} : memref<8x128xbf16, #tpu.memory_space<vmem>>, vector<8x128xbf16>,
    return
  }
  func.func @transform_0(%arg0: i32) -> (i32, i32) {
    %c0_i32 = arith.constant 0 : i32
    %c0_i32_0 = arith.constant 0 : i32
    return %arg0, %c0_i32 : i32, i32
  }
  func.func @transform_1(%arg0: i32) -> (i32, i32) {
    %c0_i32 = arith.constant 0 : i32
    %c0_i32_0 = arith.constant 0 : i32
    %c0_i32_1 = arith.constant 0 : i32
    return %c0_i32, %c0_i32_0 : i32, i32
  }
  func.func @transform_2(%arg0: i32) -> (i32, i32) {
    %c0_i32 = arith.constant 0 : i32
    %c0_i32_0 = arith.constant 0 : i32
    %c0_i32_1 = arith.constant 0 : i32
    return %c0_i32, %c0_i32_0 : i32, i32
  }
  func.func @transform_3(%arg0: i32) -> (i32, i32) {
    %c0_i32 = arith.constant 0 : i32
    %c0_i32_0 = arith.constant 0 : i32
    %c0_i32_1 = arith.constant 0 : i32
    return %c0_i32, %c0_i32_0 : i32, i32
  }
  func.func @transform_4(%arg0: i32) -> (i32, i32) {
    %c0_i32 = arith.constant 0 : i32
    %c0_i32_0 = arith.constant 0 : i32
    return %arg0, %c0_i32 : i32, i32
  }
}

</mosaic_0001>

<bundles_post_ra>
// kernel: tpu_custom_call.1
= control target key start
LH: loop header
LB: loop body
LE: loop exit
PB: predicated region body
PF: predicated region fallthrough
CT: control target
= control target key end

     0   :  { %9 = vsyncpa [#allocation3], 0  ;;  %s574_s0 = inlined_call_operand.hbm [shape: f32[8,32], index: 0, kind: input, shape index: {}]   ;;  %s575_s1 = inlined_call_operand.hbm [shape: bf16[32,128], index: 1, kind: input, shape index: {}]   ;;  %s576_s2 = inlined_call_operand.hbm [shape: bf16[256,128], index: 2, kind: input, shape index: {}]   ;;  %s577_s3 = inlined_call_operand.hbm [shape: f32[8,128], index: 3, kind: input, shape index: {}]   ;;  %s578_s4 = inlined_call_operand.hbm [shape: bf16[8,128], index: 4, kind: output, shape index: {}]  }
   0x1   :  { %10 = vsyncpa [#allocation6], 0 }
   0x2   :  { %11 = vsyncpa [#allocation9], 0  ;;  %s28_s17 = sshll.u32 %s575_s1, 4  ;;  %s29_s17 = int_to_ptr.hbm [resolvable:$true] %s28_s17 }
   0x3   :  { %12 = vsyncpa [#allocation4], 0  ;;  %s527_s18 = smov [#allocation5]   ;;  %s18_s22 = sshll.u32 %s574_s0, 4  ;;  %s19_s22 = int_to_ptr.hbm [resolvable:$true] %s18_s22 }
   0x4   :  { %s30_s19 = sshll.u32 %s527_s18, 4  ;;  %s528_s23 = smov 64   ;;  %s31_s19 = int_to_ptr.vmem [resolvable:$true] %s30_s19 }
   0x5   :  { %s529_s24 = smov 4   ;;  %s530_s25 = smov [#allocation2]  }
   0x6   :  { %36 = dma.hbm_to_vmem [thread:$0]  %s29_s17, 256, %s31_s19, [#allocation6], %s528_s23, %s528_s23, %s529_s24  }
   0x7   :  { %s20_s26 = sshll.u32 %s530_s25, 4  ;;  %s41_s29 = sshll.u32 %s576_s2, 4  ;;  %s21_s26 = int_to_ptr.vmem [resolvable:$true] %s20_s26  ;;  %s42_s29 = int_to_ptr.hbm [resolvable:$true] %s41_s29 }
   0x8   :  { %23 = dma.hbm_to_vmem [thread:$0]  %s19_s22, 128, %s21_s26, [#allocation3]  }
   0x9   :  { %s55_s5 = sshll.u32 %s577_s3, 4  ;;  %s531_s6 = smov [#allocation7]   ;;  %s56_s5 = int_to_ptr.hbm [resolvable:$true] %s55_s5 }
   0xa   :  { %s43_s7 = sshll.u32 %s531_s6, 4  ;;  %s532_s0 = smov [#allocation8]   ;;  %s44_s7 = int_to_ptr.vmem [resolvable:$true] %s43_s7 }
   0xb   :  { %49 = dma.hbm_to_vmem [thread:$0]  %s42_s29, 2048, %s44_s7, [#allocation6], %s528_s23, %s528_s23, %s529_s24  }
   0xc   :  { %s57_s8 = sshll.u32 %s532_s0, 4  ;;  %s58_s8 = int_to_ptr.vmem [resolvable:$true] %s57_s8 }
   0xd   :  { %60 = dma.hbm_to_vmem [thread:$0]  %s56_s5, 128, %s58_s8, [#allocation9]  }
   0xe   :  { %519 = dma.done.wait [#allocation3], 128  }
   0xf   :  { %520 = vsyncadd [#allocation3], 4294967168 }
  0x10   :  { %521 = dma.done.wait [#allocation6], 2304  }
  0x11   :  { %522 = vsyncadd [#allocation6], 4294964992 }
  0x12   :  { %523 = dma.done.wait [#allocation9], 128  }
  0x13   :  { %524 = vsyncadd [#allocation9], 4294967168  ;;  %v372_v0 = vld [vmem:[#allocation5 + $0x8] sm:$0xff]  ;;  %v371_v2 = vld [vmem:[#allocation5] sm:$0xff]  ;;  %vm100_vm0 = vcmask 261120   ;;  %s533_s2 = smov [#allocation10]  }
  0x14   :  { %v380_v1 = vld [vmem:[#allocation7 + $0x38] sm:$0xff]  ;;  %110 = vmatpush.bf16.msra.mxu0 %v372_v0  ;;  %v81_v3 = vld [vmem:[#allocation2] sm:$0xff]  ;;  %v379_v4 = vld [vmem:[#allocation7 + $0x30] sm:$0xff]  ;;  %s284_s3 = sshll.u32 %s533_s2, 4  ;;  %s286_s11 = sshll.u32 %s578_s4, 4  ;;  %s285_s3 = int_to_ptr.vmem [resolvable:$true] %s284_s3  ;;  %s287_s11 = int_to_ptr.hbm [resolvable:$true] %s286_s11 }
  0x15   :  { %184 = vmatpush.bf16.msra.mxu1 %v380_v1  ;;  %v82_v5 = vpack.c.bf16 %v81_v3, %v81_v3  ;;  %v378_v6 = vld [vmem:[#allocation7 + $0x28] sm:$0xff]  ;;  %v377_v7 = vld [vmem:[#allocation7 + $0x20] sm:$0xff]  ;;  %v376_v8 = vld [vmem:[#allocation7 + $0x18] sm:$0xff] }
  0x16   :  { %v375_v9 = vld [vmem:[#allocation7 + $0x10] sm:$0xff]  ;;  %v374_v10 = vld [vmem:[#allocation7 + $0x8] sm:$0xff]  ;;  %v373_v11 = vld [vmem:[#allocation7] sm:$0xff] }
  0x17   :  { %v388_v12 = vld [vmem:[#allocation7 + $0x78] sm:$0xff]  ;;  %v387_v13 = vld [vmem:[#allocation7 + $0x70] sm:$0xff]  ;;  %v386_v14 = vld [vmem:[#allocation7 + $0x68] sm:$0xff] }
  0x18   :  { %111 = vmatpush.bf16.msra.mxu0 %v371_v2  ;;  %264 = vmatpush.bf16.msra.mxu2 %v388_v12  ;;  %v385_v15 = vld [vmem:[#allocation7 + $0x60] sm:$0xff]  ;;  %v384_v16 = vld [vmem:[#allocation7 + $0x58] sm:$0xff]  ;;  %v383_v17 = vld [vmem:[#allocation7 + $0x50] sm:$0xff] }
  0x19   :  { %185 = vmatpush.bf16.msra.mxu1 %v379_v4  ;;  %v396_v18 = vld [vmem:[#allocation8] ss:$0 sm:$0xff]  ;;  %v382_v24 = vld [vmem:[#allocation7 + $0x48] sm:$0xff]  ;;  %v397_v26 = vld [vmem:[#allocation8 + $0x1] ss:$0 sm:$0xff] }
  0x1a   :  { %v381_v25 = vld [vmem:[#allocation7 + $0x40] sm:$0xff] }
  0x1b   :  { %306 = vmatmul.msk.bf16.vlgmr.msra.gmra.mxu0 %vm100_vm0, %v82_v5  ;;  %v398_v32 = vld [vmem:[#allocation8 + $0x2] ss:$0 sm:$0xff] }
  0x1c   :  { %265 = vmatpush.bf16.msra.mxu2 %v387_v13 }
  0x1d   :  { %186 = vmatpush.bf16.msra.mxu1 %v378_v6 }
  0x20   :  { %266 = vmatpush.bf16.msra.mxu2 %v386_v14 }
  0x21   :  { %187 = vmatpush.bf16.msra.mxu1 %v377_v7 }
  0x24   :  { %267 = vmatpush.bf16.msra.mxu2 %v385_v15 }
  0x25   :  { %188 = vmatpush.bf16.msra.mxu1 %v376_v8 }
  0x28   :  { %268 = vmatpush.bf16.msra.mxu2 %v384_v16 }
  0x29   :  { %189 = vmatpush.bf16.msra.mxu1 %v375_v9 }
  0x2c   :  { %269 = vmatpush.bf16.msra.mxu2 %v383_v17 }
  0x2d   :  { %190 = vmatpush.bf16.msra.mxu1 %v374_v10 }
  0x30   :  { %270 = vmatpush.bf16.msra.mxu2 %v382_v24 }
  0x31   :  { %191 = vmatpush.bf16.msra.mxu1 %v373_v11 }
  0x34   :  { %271 = vmatpush.bf16.msra.mxu2 %v381_v25 }
  0x98   :  { %v113_v19 = vpop.f32.mrf.mxu0 }
  0x99   :  { %v114_v20 = vadd.f32 %v396_v18, %v113_v19 }
  0x9b   :  { %v117_v21 = vmax.f32 %v114_v20, 0.0 }
  0x9d   :  { %v118_v22 = vpack.c.bf16 %v117_v21, %v117_v21 }
  0x9f   :  { %192 = vmatmul.bf16.vlgmr.msra.gmra.mxu1 %v118_v22 }
  0xa0   :  { %v115_v23 = vpop.f32.mrf.mxu0 }
 0x11c   :  { %v193_v27 = vpop.f32.mrf.mxu1 }
 0x11d   :  { %v194_v28 = vadd.f32 %v397_v26, %v193_v27 }
 0x11f   :  { %v197_v29 = vmax.f32 %v194_v28, 0.0 }
 0x121   :  { %v198_v30 = vpack.c.bf16 %v197_v29, %v197_v29 }
 0x123   :  { %272 = vmatmul.bf16.vlgmr.msra.gmra.mxu2 %v198_v30 }
 0x124   :  { %v195_v31 = vpop.f32.mrf.mxu1 }
 0x1a6   :  { %v273_v33 = vpop.f32.mrf.mxu2 }
 0x1a7   :  { %v274_v34 = vadd.f32 %v398_v32, %v273_v33 }
 0x1a9   :  { %v277_v35 = vpack.c.bf16 %v274_v34, %v274_v34 }
 0x1ab   :  { %278 = vst [vmem:[#allocation10] sm:$0xf] %v277_v35 }
 0x1ac   :  { %289 = dma.vmem_to_hbm [thread:$0]  %s285_s3, 64, %s287_s11, [#allocation4]  }
 0x1ae   :  { %v275_v36 = vpop.f32.mrf.mxu2 }
 0x1af   :  { %525 = dma.done.wait [#allocation4], 64  }
 0x1b0   :  { %526 = vsyncadd [#allocation4], 4294967232 }
 0x1b1   :  { %294 = vsyncpa [#allocation3], 1 }
 0x1b2   :  { %295 = vsyncpa [#allocation6], 1 }
 0x1b3   :  { %296 = vsyncpa [#allocation9], 1 }
 0x1b4   :  { %297 = vsyncpa [#allocation4], 1 }

</bundles_post_ra>
